<compile_context>
chip_gen: v6e
topology: v6e:2x2x1
jax: 0.10.0
libtpu: 0.0.40
codegen_flags: <defaults>
</compile_context>

<pallas_src>
import functools

import jax
import jax.numpy as jnp
from jax.experimental import pallas as pl
from jax.experimental.pallas import tpu as pltpu

_LANE = 128      # lane (last-dim) width
_BF16_ROWS = 16  # bf16 sublane packing (rows per native tile)


def _round_up(n, m):
    return ((n + m - 1) // m) * m


def _pad2d(a, rows, cols):
    return jnp.pad(a, ((0, rows - a.shape[0]), (0, cols - a.shape[1])))


def mlp_kernel(x_ref, w1_ref, b1_ref, w2_ref, b2_ref, w3_ref, b3_ref, o_ref):
    # x arrives unpadded f32; cast to bf16 just before the MXU.
    xb = x_ref[...].astype(jnp.bfloat16)

    # fc1 + ReLU: bf16 operands on the MXU, f32 accumulation & elementwise.
    h1 = jnp.dot(xb, w1_ref[...], preferred_element_type=jnp.float32)
    h1 = jnp.maximum(h1 + b1_ref[...], 0.0)

    # fc2 + ReLU
    h2 = jnp.dot(h1.astype(jnp.bfloat16), w2_ref[...],
                 preferred_element_type=jnp.float32)
    h2 = jnp.maximum(h2 + b2_ref[...], 0.0)

    # fc3 + Sigmoid (exp and approx reciprocal both ride the EUP slot).
    h3 = jnp.dot(h2.astype(jnp.bfloat16), w3_ref[...],
                 preferred_element_type=jnp.float32)
    h3 = h3 + b3_ref[...]
    o_ref[...] = pl.reciprocal(1.0 + jnp.exp(-h3), approx=True).astype(o_ref.dtype)


def prepare_params(params):
    """One-time preparation: pad hidden dims to 128 lanes, cast weights to bf16.

    Input-feature dim of w1 and output-feature dim of w3 stay UNPADDED so x and
    the kernel output can use full-dim (unpadded) blocks.  Zero pad rows/cols
    and zero biases keep the math exact.
    """
    w1, b1 = params["w1"], params["b1"]
    w2, b2 = params["w2"], params["b2"]
    w3, b3 = params["w3"], params["b3"]

    in_size = w1.shape[0]
    h1_p = _round_up(w1.shape[1], _LANE)
    h2_p = _round_up(w2.shape[1], _LANE)
    out_size = w3.shape[1]

    return {
        "w1": _pad2d(w1, in_size, h1_p).astype(jnp.bfloat16),
        "b1": _pad2d(b1, 1, h1_p),
        "w2": _pad2d(w2, h1_p, h2_p).astype(jnp.bfloat16),
        "b2": _pad2d(b2, 1, h2_p),
        "w3": _pad2d(w3, h2_p, out_size).astype(jnp.bfloat16),
        "b3": b3,
        "out_size": out_size,
    }


@functools.partial(jax.jit, static_argnames=("block_b",))
def net_forward(x, prepared, *, block_b=512):
    """x: (B, in_size) f32.  prepared: output of prepare_params (called once)."""
    w1, b1 = prepared["w1"], prepared["b1"]
    w2, b2 = prepared["w2"], prepared["b2"]
    w3, b3 = prepared["w3"], prepared["b3"]
    B, in_size = x.shape
    out_size = w3.shape[1]

    # Batch tile selection (static under jit):
    #  * large batch: block_b (or a divisor of B among block_b/2, block_b/4 so
    #    no wrapper-side batch pad pass is needed),
    #  * small batch: >=2 tiles of a multiple of 16 rows so both v7x
    #    TensorCores get work (no effect on single-TC v5e/v6e).
    if B >= block_b:
        tb = block_b
        for cand in (block_b, block_b // 2, block_b // 4):
            if cand >= _BF16_ROWS and B % cand == 0:
                tb = cand
                break
    else:
        tb = max(_BF16_ROWS, _round_up(pl.cdiv(B, 2), _BF16_ROWS))
    bp = _round_up(B, tb)

    # Only pad the batch dim if the tile doesn't divide B.
    xp = x if bp == B else jnp.pad(x, ((0, bp - B), (0, 0)))

    # Weights/biases: same (0, 0) block every grid step -> VMEM-resident.
    resident = lambda a: pl.BlockSpec(a.shape, lambda i: (0, 0))

    out = pl.pallas_call(
        mlp_kernel,
        out_shape=jax.ShapeDtypeStruct((bp, out_size), jnp.float32),
        grid=(bp // tb,),
        in_specs=[
            # x: batch-tiled, feature dim unpadded (full-dim block is legal).
            pl.BlockSpec((tb, in_size), lambda i: (i, 0)),
            resident(w1), resident(b1),
            resident(w2), resident(b2),
            resident(w3), resident(b3),
        ],
        # Output unpadded in the feature dim (full-dim block).
        out_specs=pl.BlockSpec((tb, out_size), lambda i: (i, 0)),
        compiler_params=pltpu.CompilerParams(
            dimension_semantics=("parallel",)),
    )(xp, w1, b1, w2, b2, w3, b3)

    return out if bp == B else out[:B]


def init_params(key, input_size, hidden_1_size, hidden_2_size, out_size):
    """Deterministic init mirroring nn.Linear's uniform(-1/sqrt(fan_in), +)."""
    ks = jax.random.split(key, 6)

    def linear(kw, kb, fan_in, fan_out):
        bound = 1.0 / jnp.sqrt(fan_in)
        w = jax.random.uniform(kw, (fan_in, fan_out), jnp.float32, -bound, bound)
        b = jax.random.uniform(kb, (1, fan_out), jnp.float32, -bound, bound)
        return w, b

    w1, b1 = linear(ks[0], ks[1], input_size, hidden_1_size)
    w2, b2 = linear(ks[2], ks[3], hidden_1_size, hidden_2_size)
    w3, b3 = linear(ks[4], ks[5], hidden_2_size, out_size)
    return {"w1": w1, "b1": b1, "w2": w2, "b2": b2, "w3": w3, "b3": b3}


if __name__ == "__main__":
    # Small shapes consistent with the module; batch 256 exercises the
    # batch-tiled grid (2 tiles of 128 rows -> both TCs busy on v7x).
    batch = 256
    input_size, hidden_1_size, hidden_2_size, out_size = 16, 32, 32, 8

    key = jax.random.PRNGKey(0)
    kx, kp = jax.random.split(key)
    x = jax.random.normal(kx, (batch, input_size), jnp.float32)
    params = init_params(kp, input_size, hidden_1_size, hidden_2_size, out_size)

    # One-time padding/casting of the parameters (hoisted out of the forward).
    prepared = jax.tree_util.tree_map(jnp.asarray, prepare_params(params))

    out = net_forward(x, prepared)
    out = jax.block_until_ready(out)
    assert out.shape == (batch, out_size)

    # Reference 1: mirrors the kernel's numerics (bf16 matmul operands,
    # f32 accumulation / elementwise) -> tight tolerance.
    xb = x.astype(jnp.bfloat16)
    w1b = params["w1"].astype(jnp.bfloat16)
    w2b = params["w2"].astype(jnp.bfloat16)
    w3b = params["w3"].astype(jnp.bfloat16)
    h = jnp.maximum(jnp.dot(xb, w1b, preferred_element_type=jnp.float32)
                    + params["b1"], 0.0)
    h = jnp.maximum(jnp.dot(h.astype(jnp.bfloat16), w2b,
                            preferred_element_type=jnp.float32) + params["b2"], 0.0)
    logits = jnp.dot(h.astype(jnp.bfloat16), w3b,
                     preferred_element_type=jnp.float32) + params["b3"]
    ref_bf16 = jax.nn.sigmoid(logits)
    assert jnp.allclose(out, ref_bf16, atol=2e-3), "mismatch vs bf16-mirrored reference"

    # Reference 2: full-f32 module semantics -> loose tolerance (bf16 quantization).
    hf = jnp.maximum(x @ params["w1"] + params["b1"], 0.0)
    hf = jnp.maximum(hf @ params["w2"] + params["b2"], 0.0)
    ref_f32 = jax.nn.sigmoid(hf @ params["w3"] + params["b3"])
    assert jnp.allclose(out, ref_f32, atol=3e-2), "mismatch vs f32 module reference"

    print("KERNEL_OK")
</pallas_src>

<mosaic_0001>
module attributes {stable_mosaic.version = 11 : i64} {
  func.func @mlp_kernel(%arg0: i32, %arg1: memref<128x16xf32, #tpu.memory_space<vmem>>, %arg2: memref<16x128xbf16, #tpu.memory_space<vmem>>, %arg3: memref<1x128xf32, #tpu.memory_space<vmem>>, %arg4: memref<128x128xbf16, #tpu.memory_space<vmem>>, %arg5: memref<1x128xf32, #tpu.memory_space<vmem>>, %arg6: memref<128x8xbf16, #tpu.memory_space<vmem>>, %arg7: memref<1x8xf32, #tpu.memory_space<vmem>>, %arg8: memref<128x8xf32, #tpu.memory_space<vmem>>) attributes {dimension_semantics = [#tpu.dimension_semantics<parallel>], iteration_bounds = array<i64: 2>, scalar_prefetch = 0 : i64, scratch_operands = 0 : i64, tpu.core_type = #tpu.core_type<tc>, window_params = [{transform_indices = @transform_0, window_bounds = array<i64: 128, 16>}, {pipeline_mode = #tpu.pipeline_mode<synchronous>, transform_indices = @transform_1, window_bounds = array<i64: 16, 128>}, {pipeline_mode = #tpu.pipeline_mode<synchronous>, transform_indices = @transform_2, window_bounds = array<i64: 1, 128>}, {pipeline_mode = #tpu.pipeline_mode<synchronous>, transform_indices = @transform_3, window_bounds = array<i64: 128, 128>}, {pipeline_mode = #tpu.pipeline_mode<synchronous>, transform_indices = @transform_4, window_bounds = array<i64: 1, 128>}, {pipeline_mode = #tpu.pipeline_mode<synchronous>, transform_indices = @transform_5, window_bounds = array<i64: 128, 8>}, {pipeline_mode = #tpu.pipeline_mode<synchronous>, transform_indices = @transform_6, window_bounds = array<i64: 1, 8>}, {transform_indices = @transform_7, window_bounds = array<i64: 128, 8>}]} {
    %c0 = arith.constant 0 : index
    %c0_0 = arith.constant 0 : index
    %0 = vector.load %arg1[%c0, %c0_0] : memref<128x16xf32, #tpu.memory_space<vmem>>, vector<128x16xf32>
    %1 = arith.truncf %0 : vector<128x16xf32> to vector<128x16xbf16>
    %c0_1 = arith.constant 0 : index
    %c0_2 = arith.constant 0 : index
    %2 = vector.load %arg2[%c0_1, %c0_2] : memref<16x128xbf16, #tpu.memory_space<vmem>>, vector<16x128xbf16>
    %cst = arith.constant dense<0.000000e+00> : vector<128x128xf32>
    %3 = tpu.matmul %1, %2, %cst {dimension_numbers = #tpu.dot_dimension_numbers<[1], [0], [0], [1], [0, 0, 1, 1], [], []>} : vector<128x16xbf16>, vector<16x128xbf16>, vector<128x128xf32> -> vector<128x128xf32>
    %c0_3 = arith.constant 0 : index
    %c0_4 = arith.constant 0 : index
    %4 = vector.load %arg3[%c0_3, %c0_4] : memref<1x128xf32, #tpu.memory_space<vmem>>, vector<1x128xf32>
    %5 = vector.broadcast %4 : vector<1x128xf32> to vector<128x128xf32>
    %6 = arith.addf %3, %5 : vector<128x128xf32>
    %cst_5 = arith.constant 0.000000e+00 : f32
    %7 = vector.broadcast %cst_5 : f32 to vector<128x128xf32>
    %8 = arith.maximumf %6, %7 : vector<128x128xf32>
    %9 = arith.truncf %8 : vector<128x128xf32> to vector<128x128xbf16>
    %c0_6 = arith.constant 0 : index
    %c0_7 = arith.constant 0 : index
    %10 = vector.load %arg4[%c0_6, %c0_7] : memref<128x128xbf16, #tpu.memory_space<vmem>>, vector<128x128xbf16>
    %cst_8 = arith.constant dense<0.000000e+00> : vector<128x128xf32>
    %11 = tpu.matmul %9, %10, %cst_8 {dimension_numbers = #tpu.dot_dimension_numbers<[1], [0], [0], [1], [0, 0, 1, 1], [], []>} : vector<128x128xbf16>, vector<128x128xbf16>, vector<128x128xf32> -> vector<128x128xf32>
    %c0_9 = arith.constant 0 : index
    %c0_10 = arith.constant 0 : index
    %12 = vector.load %arg5[%c0_9, %c0_10] : memref<1x128xf32, #tpu.memory_space<vmem>>, vector<1x128xf32>
    %13 = vector.broadcast %12 : vector<1x128xf32> to vector<128x128xf32>
    %14 = arith.addf %11, %13 : vector<128x128xf32>
    %cst_11 = arith.constant 0.000000e+00 : f32
    %15 = vector.broadcast %cst_11 : f32 to vector<128x128xf32>
    %16 = arith.maximumf %14, %15 : vector<128x128xf32>
    %17 = arith.truncf %16 : vector<128x128xf32> to vector<128x128xbf16>
    %c0_12 = arith.constant 0 : index
    %c0_13 = arith.constant 0 : index
    %18 = vector.load %arg6[%c0_12, %c0_13] : memref<128x8xbf16, #tpu.memory_space<vmem>>, vector<128x8xbf16>
    %cst_14 = arith.constant dense<0.000000e+00> : vector<128x8xf32>
    %19 = tpu.matmul %17, %18, %cst_14 {dimension_numbers = #tpu.dot_dimension_numbers<[1], [0], [0], [1], [0, 0, 1, 1], [], []>} : vector<128x128xbf16>, vector<128x8xbf16>, vector<128x8xf32> -> vector<128x8xf32>
    %c0_15 = arith.constant 0 : index
    %c0_16 = arith.constant 0 : index
    %20 = vector.load %arg7[%c0_15, %c0_16] : memref<1x8xf32, #tpu.memory_space<vmem>>, vector<1x8xf32>
    %21 = vector.broadcast %20 : vector<1x8xf32> to vector<128x8xf32>
    %22 = arith.addf %19, %21 : vector<128x8xf32>
    %cst_17 = arith.constant 0.000000e+00 : f32
    %23 = vector.broadcast %cst_17 : f32 to vector<128x8xf32>
    %24 = arith.subf %23, %22 : vector<128x8xf32>
    %25 = math.exp %24 : vector<128x8xf32>
    %cst_18 = arith.constant 1.000000e+00 : f32
    %26 = vector.broadcast %cst_18 : f32 to vector<128x8xf32>
    %27 = arith.addf %26, %25 : vector<128x8xf32>
    %28 = tpu.reciprocal %27 {approx = true} : vector<128x8xf32> -> vector<128x8xf32>
    %c0_19 = arith.constant 0 : index
    %c0_20 = arith.constant 0 : index
    %29 = vector.load %arg8[%c0_19, %c0_20] : memref<128x8xf32, #tpu.memory_space<vmem>>, vector<128x8xf32>
    tpu.vector_store %arg8[%c0_19, %c0_20], %28 {strides = array<i32>} : memref<128x8xf32, #tpu.memory_space<vmem>>, vector<128x8xf32>,
    return
  }
  func.func @transform_0(%arg0: i32) -> (i32, i32) {
    %c0_i32 = arith.constant 0 : i32
    %c0_i32_0 = arith.constant 0 : i32
    return %arg0, %c0_i32 : i32, i32
  }
  func.func @transform_1(%arg0: i32) -> (i32, i32) {
    %c0_i32 = arith.constant 0 : i32
    %c0_i32_0 = arith.constant 0 : i32
    %c0_i32_1 = arith.constant 0 : i32
    return %c0_i32, %c0_i32_0 : i32, i32
  }
  func.func @transform_2(%arg0: i32) -> (i32, i32) {
    %c0_i32 = arith.constant 0 : i32
    %c0_i32_0 = arith.constant 0 : i32
    %c0_i32_1 = arith.constant 0 : i32
    return %c0_i32, %c0_i32_0 : i32, i32
  }
  func.func @transform_3(%arg0: i32) -> (i32, i32) {
    %c0_i32 = arith.constant 0 : i32
    %c0_i32_0 = arith.constant 0 : i32
    %c0_i32_1 = arith.constant 0 : i32
    return %c0_i32, %c0_i32_0 : i32, i32
  }
  func.func @transform_4(%arg0: i32) -> (i32, i32) {
    %c0_i32 = arith.constant 0 : i32
    %c0_i32_0 = arith.constant 0 : i32
    %c0_i32_1 = arith.constant 0 : i32
    return %c0_i32, %c0_i32_0 : i32, i32
  }
  func.func @transform_5(%arg0: i32) -> (i32, i32) {
    %c0_i32 = arith.constant 0 : i32
    %c0_i32_0 = arith.constant 0 : i32
    %c0_i32_1 = arith.constant 0 : i32
    return %c0_i32, %c0_i32_0 : i32, i32
  }
  func.func @transform_6(%arg0: i32) -> (i32, i32) {
    %c0_i32 = arith.constant 0 : i32
    %c0_i32_0 = arith.constant 0 : i32
    %c0_i32_1 = arith.constant 0 : i32
    return %c0_i32, %c0_i32_0 : i32, i32
  }
  func.func @transform_7(%arg0: i32) -> (i32, i32) {
    %c0_i32 = arith.constant 0 : i32
    %c0_i32_0 = arith.constant 0 : i32
    return %arg0, %c0_i32 : i32, i32
  }
}

</mosaic_0001>

<bundles_post_ra>
// kernel: net_forward.1
= control target key start
LH: loop header
LB: loop body
LE: loop exit
PB: predicated region body
PF: predicated region fallthrough
CT: control target
= control target key end

     0   :  { %s1280_s24 = smov 0   ;;  %s1442_s0 = inlined_call_operand.vmem [shape: f32[256,16], index: 0, kind: input, shape index: {}]   ;;  %s1443_s1 = inlined_call_operand.vmem [shape: bf16[16,128], index: 1, kind: input, shape index: {}]   ;;  %s1444_s2 = inlined_call_operand.vmem [shape: f32[1,128], index: 2, kind: input, shape index: {}]   ;;  %s1445_s3 = inlined_call_operand.vmem [shape: bf16[128,128], index: 3, kind: input, shape index: {}]   ;;  %s1446_s4 = inlined_call_operand.vmem [shape: f32[1,128], index: 4, kind: input, shape index: {}]   ;;  %s1447_s5 = inlined_call_operand.vmem [shape: bf16[128,8], index: 5, kind: input, shape index: {}]   ;;  %s1448_s6 = inlined_call_operand.vmem [shape: f32[1,8], index: 6, kind: input, shape index: {}]   ;;  %s1449_s7 = inlined_call_operand.vmem [shape: f32[256,8], index: 7, kind: output, shape index: {}]  }
   0x1 LB: > { %s981_s25 = sadd.s32 4294967295, %s1238_s24   ;;  %p985_p0 = scmp.ge.s32.totalorder %s1238_s24, 1  ;;  %s1238_s24 = sphi %s1280_s24, %s17_s24  }
   0x2   : > { %p238_p1 = scmp.lt.s32.totalorder %s1238_s24, 3 }
   0x4   : > { %p239_p2 = pnand %p985_p0, %p238_p1 }
   0x5   : > { %s986_s28 = sshll.u32 (!%p239_p2), %s981_s25, 4 }
   0x6   : > { %242 = sbr.rel (%p239_p2) target bundleno = 691 (0x2b3), region = 48  ;;  %p271_p3 = scmp.lt.s32.totalorder (!%p239_p2), %s986_s28, 31 }
   0xb   : > { %v1151_v0 = vld [vmem:[%s1443_s1] sm:$0xff]   ;;  %v1152_v1 = vld [vmem:[%s1445_s3 + $0x38] sm:$0xff]   ;;  %s1451_s28 = smov (!%p271_p3, %s986_s28), 31  ;;  %v1153_v2 = vld [vmem:[%s1445_s3 + $0x30] sm:$0xff]   ;;  %vm322_vm0 = vcmask 130048   ;;  %vm908_vm1 = vcmask 64512  }
   0xc   : > { %1061 = vmatprep.subr.bf16.mxu0 %v1151_v0  ;;  %1079 = vmatprep.subr.bf16.mxu1 %v1152_v1  ;;  %s987_s10 = sshll.u32 %s1451_s28, 3  ;;  %v1154_v3 = vld [vmem:[%s1445_s3 + $0x28] sm:$0xff]   ;;  %v1155_v13 = vld [vmem:[%s1445_s3 + $0x20] sm:$0xff]   ;;  %v1156_v18 = vld [vmem:[%s1445_s3 + $0x18] sm:$0xff]  }
   0xd   : > { %1062 = vmatpush3.bf16.msra.mxu0 %v1151_v0  ;;  %1080 = vmatpush3.bf16.msra.mxu1 %v1152_v1  ;;  %s1305_s13 = scalar_lea.vmem %s1442_s0, %s987_s10  ;;  %v1157_v30 = vld [vmem:[%s1445_s3 + $0x10] sm:$0xff]   ;;  %v1158_v31 = vld [vmem:[%s1445_s3 + $0x8] sm:$0xff]   ;;  %v1159_v32 = vld [vmem:[%s1445_s3] sm:$0xff]   ;;  %s1405_s9 = scalar_lea.vmem %s1449_s7, %s987_s10 }
   0xe   : > { %1081 = vmatprep.subr.bf16.mxu1 %v1153_v2  ;;  %v283_v4 = vld [vmem:[%s1305_s13] sm:$0xff]  ;;  %v284_v5 = vld [vmem:[%s1305_s13 + $0x8] sm:$0xff]  ;;  %v285_v6 = vld [vmem:[%s1305_s13 + $0x10] sm:$0xff] }
   0xf   : > { %v299_v7 = vpack.c.bf16 %v284_v5, %v283_v4  ;;  %v286_v8 = vld [vmem:[%s1305_s13 + $0x18] sm:$0xff]  ;;  %v287_v9 = vld [vmem:[%s1305_s13 + $0x20] sm:$0xff]  ;;  %v288_v10 = vld [vmem:[%s1305_s13 + $0x28] sm:$0xff] }
  0x10   : > { %v300_v11 = vpack.c.bf16 %v286_v8, %v285_v6  ;;  %v301_v12 = vpack.c.bf16 %v288_v10, %v287_v9  ;;  %v289_v14 = vld [vmem:[%s1305_s13 + $0x30] sm:$0xff]  ;;  %v290_v15 = vld [vmem:[%s1305_s13 + $0x38] sm:$0xff]  ;;  %v291_v16 = vld [vmem:[%s1305_s13 + $0x40] sm:$0xff] }
  0x11   : > { %1082 = vmatpush3.bf16.msra.mxu1 %v1153_v2  ;;  %1063 = vmatprep.mubr.msk.bf16.mxu0 %vm322_vm0, %v299_v7  ;;  %v292_v17 = vld [vmem:[%s1305_s13 + $0x48] sm:$0xff]  ;;  %v302_v19 = vpack.c.bf16 %v290_v15, %v289_v14  ;;  %v293_v21 = vld [vmem:[%s1305_s13 + $0x50] sm:$0xff]  ;;  %v294_v22 = vld [vmem:[%s1305_s13 + $0x58] sm:$0xff] }
  0x12   : > { %1083 = vmatprep.subr.bf16.mxu1 %v1154_v3  ;;  %1064 = vmatmul.mubr.msk.bf16.vlgmr.msra.gmra.mxu0 %vm322_vm0, %v300_v11  ;;  %v303_v20 = vpack.c.bf16 %v292_v17, %v291_v16  ;;  %v295_v23 = vld [vmem:[%s1305_s13 + $0x60] sm:$0xff]  ;;  %v296_v24 = vld [vmem:[%s1305_s13 + $0x68] sm:$0xff]  ;;  %v304_v25 = vpack.c.bf16 %v294_v22, %v293_v21  ;;  %v297_v27 = vld [vmem:[%s1305_s13 + $0x70] sm:$0xff] }
  0x13   : > { %1067 = vmatprep.mubr.msk.bf16.mxu0 %vm322_vm0, %v301_v12  ;;  %v305_v26 = vpack.c.bf16 %v296_v24, %v295_v23  ;;  %v298_v28 = vld [vmem:[%s1305_s13 + $0x78] sm:$0xff]  ;;  %v1161_v34 = vld [vmem:[%s1447_s5 + $0x30] sm:$0xff]   ;;  %v1162_v35 = vld [vmem:[%s1447_s5 + $0x28] sm:$0xff]  }
  0x14   : > { %v306_v29 = vpack.c.bf16 %v298_v28, %v297_v27  ;;  %v1160_v33 = vld [vmem:[%s1447_s5 + $0x38] sm:$0xff]   ;;  %v1163_v36 = vld [vmem:[%s1447_s5 + $0x20] sm:$0xff]  }
  0x15   : > { %1084 = vmatpush3.bf16.msra.mxu1 %v1154_v3  ;;  %1111 = vmatprep.subr.bf16.mxu0 %v1160_v33  ;;  %v1164_v37 = vld [vmem:[%s1447_s5 + $0x18] sm:$0xff]   ;;  %v990_v40 = vld [vmem:[%s1444_s2] ss:$0 sm:$0xff] }
  0x16   : > { %1085 = vmatprep.subr.bf16.mxu1 %v1155_v13  ;;  %1112 = vmatpush3.bf16.msra.mxu0 %v1160_v33  ;;  %v1167_v33 = vld [vmem:[%s1447_s5] sm:$0xff]  }
  0x17   : > { %1113 = vmatprep.subr.bf16.mxu0 %v1161_v34 }
  0x19   : > { %1086 = vmatpush3.bf16.msra.mxu1 %v1155_v13 }
  0x1a   : > { %1087 = vmatprep.subr.bf16.mxu1 %v1156_v18  ;;  %1068 = vmatmul.mubr.msk.bf16.gmra.mxu0 %vm322_vm0, %v302_v19 }
  0x1b   : > { %1071 = vmatprep.mubr.msk.bf16.mxu0 %vm322_vm0, %v303_v20  ;;  %1114 = vmatpush3.bf16.msra.mxu0 %v1161_v34 }
  0x1c   : > { %1115 = vmatprep.subr.bf16.mxu0 %v1162_v35 }
  0x1d   : > { %1088 = vmatpush3.bf16.msra.mxu1 %v1156_v18 }
  0x1e   : > { %1089 = vmatprep.subr.bf16.mxu1 %v1157_v30 }
  0x1f   : > { %1116 = vmatpush3.bf16.msra.mxu0 %v1162_v35 }
  0x20   : > { %1117 = vmatprep.subr.bf16.mxu0 %v1163_v36 }
  0x21   : > { %1090 = vmatpush3.bf16.msra.mxu1 %v1157_v30 }
  0x22   : > { %1072 = vmatmul.mubr.msk.bf16.gmra.mxu0 %vm322_vm0, %v304_v25  ;;  %1091 = vmatprep.subr.bf16.mxu1 %v1158_v31 }
  0x23   : > { %1075 = vmatprep.mubr.msk.bf16.mxu0 %vm322_vm0, %v305_v26  ;;  %1118 = vmatpush3.bf16.msra.mxu0 %v1163_v36  ;;  %v1000_v36 = vld [vmem:[%s1446_s4] ss:$0 sm:$0xff] }
  0x24   : > { %1119 = vmatprep.subr.bf16.mxu0 %v1164_v37 }
  0x25   : > { %1092 = vmatpush3.bf16.msra.mxu1 %v1158_v31  ;;  %v1165_v31 = vld [vmem:[%s1447_s5 + $0x10] sm:$0xff]  }
  0x26   : > { %1093 = vmatprep.subr.bf16.mxu1 %v1159_v32 }
  0x27   : > { %1120 = vmatpush3.bf16.msra.mxu0 %v1164_v37 }
  0x28   : > { %1121 = vmatprep.subr.bf16.mxu0 %v1165_v31 }
  0x29   : > { %1094 = vmatpush3.bf16.msra.mxu1 %v1159_v32  ;;  %v1166_v32 = vld [vmem:[%s1447_s5 + $0x8] sm:$0xff]  }
  0x2a   : > { %1076 = vmatmul.mubr.msk.bf16.gmra.mxu0 %vm322_vm0, %v306_v29 }
  0x2b   : > { %1122 = vmatpush3.bf16.msra.mxu0 %v1165_v31 }
  0x2c   : > { %1123 = vmatprep.subr.bf16.mxu0 %v1166_v32 }
  0x2f   : > { %1124 = vmatpush3.bf16.msra.mxu0 %v1166_v32 }
  0x30   : > { %1125 = vmatprep.subr.bf16.mxu0 %v1167_v33 }
  0x33   : > { %1126 = vmatpush3.bf16.msra.mxu0 %v1167_v33 }
  0xd2   : > { %v1065_v38 = vpop.f32.mrf.mxu0 }
  0xd3   : > { %v390_v44 = vadd.f32 %v1065_v38, %v990_v40 }
  0xd4   : > { %v381_v39 = vpop.f32.mrf.mxu0 }
  0xd5   : > { %v382_v42 = vadd.f32 %v990_v40, %v381_v39  ;;  %v446_v51 = vmax.f32 %v390_v44, 0.0 }
  0xd6   : > { %v1066_v41 = vpop.f32.mrf.mxu0 }
  0xd7   : > { %v393_v43 = vadd.f32 %v1066_v41, %v990_v40  ;;  %v444_v49 = vmax.f32 %v382_v42, 0.0 }
  0xd8   : > { %v384_v45 = vpop.f32.mrf.mxu0 }
  0xd9   : > { %v385_v46 = vadd.f32 %v990_v40, %v384_v45  ;;  %v447_v47 = vmax.f32 %v393_v43, 0.0 }
  0xda   : > { %v1069_v48 = vpop.f32.mrf.mxu0 }
  0xdb   : > { %v445_v50 = vmax.f32 %v385_v46, 0.0  ;;  %v461_v54 = vpack.c.bf16 %v447_v47, %v446_v51  ;;  %v406_v58 = vadd.f32 %v1069_v48, %v990_v40 }
  0xdc   : > { %v397_v52 = vpop.f32.mrf.mxu0 }
  0xdd   : > { %v460_v53 = vpack.c.bf16 %v445_v50, %v444_v49  ;;  %v398_v56 = vadd.f32 %v990_v40, %v397_v52  ;;  %v450_v1 = vmax.f32 %v406_v58, 0.0 }
  0xde   : > { %v1070_v55 = vpop.f32.mrf.mxu0 }
  0xdf   : > { %v409_v57 = vadd.f32 %v1070_v55, %v990_v40  ;;  %1095 = vmatprep.mubr.bf16.mxu1 %v460_v53  ;;  %v448_v63 = vmax.f32 %v398_v56, 0.0 }
  0xe0   : > { %v400_v59 = vpop.f32.mrf.mxu0  ;;  %1096 = vmatmul.mubr.bf16.vlgmr.msra.gmra.mxu1 %v461_v54 }
  0xe1   : > { %v401_v60 = vadd.f32 %v990_v40, %v400_v59  ;;  %v451_v61 = vmax.f32 %v409_v57, 0.0 }
  0xe2   : > { %v1073_v62 = vpop.f32.mrf.mxu0 }
  0xe3   : > { %v449_v0 = vmax.f32 %v401_v60, 0.0  ;;  %v463_v4 = vpack.c.bf16 %v451_v61, %v450_v1  ;;  %v422_v8 = vadd.f32 %v1073_v62, %v990_v40 }
  0xe4   : > { %v413_v2 = vpop.f32.mrf.mxu0 }
  0xe5   : > { %v462_v3 = vpack.c.bf16 %v449_v0, %v448_v63  ;;  %v414_v6 = vadd.f32 %v990_v40, %v413_v2  ;;  %v454_v15 = vmax.f32 %v422_v8, 0.0 }
  0xe6   : > { %v1074_v5 = vpop.f32.mrf.mxu0 }
  0xe7   : > { %v425_v7 = vadd.f32 %v1074_v5, %v990_v40  ;;  %1099 = vmatprep.mubr.bf16.mxu1 %v462_v3  ;;  %v452_v13 = vmax.f32 %v414_v6, 0.0 }
  0xe8   : > { %v416_v9 = vpop.f32.mrf.mxu0  ;;  %1100 = vmatmul.mubr.bf16.gmra.mxu1 %v463_v4 }
  0xe9   : > { %v417_v10 = vadd.f32 %v990_v40, %v416_v9  ;;  %v455_v11 = vmax.f32 %v425_v7, 0.0 }
  0xea   : > { %v1077_v12 = vpop.f32.mrf.mxu0 }
  0xeb   : > { %v453_v14 = vmax.f32 %v417_v10, 0.0  ;;  %v465_v18 = vpack.c.bf16 %v455_v11, %v454_v15  ;;  %v438_v22 = vadd.f32 %v1077_v12, %v990_v40 }
  0xec   : > { %v429_v16 = vpop.f32.mrf.mxu0 }
  0xed   : > { %v464_v17 = vpack.c.bf16 %v453_v14, %v452_v13  ;;  %v430_v20 = vadd.f32 %v990_v40, %v429_v16  ;;  %v458_v28 = vmax.f32 %v438_v22, 0.0 }
  0xee   : > { %v1078_v19 = vpop.f32.mrf.mxu0 }
  0xef   : > { %v441_v21 = vadd.f32 %v1078_v19, %v990_v40  ;;  %1103 = vmatprep.mubr.bf16.mxu1 %v464_v17  ;;  %v456_v26 = vmax.f32 %v430_v20, 0.0 }
  0xf0   : > { %v432_v23 = vpop.f32.mrf.mxu0  ;;  %1104 = vmatmul.mubr.bf16.gmra.mxu1 %v465_v18 }
  0xf1   : > { %v433_v24 = vadd.f32 %v990_v40, %v432_v23  ;;  %v459_v25 = vmax.f32 %v441_v21, 0.0 }
  0xf3   : > { %v457_v27 = vmax.f32 %v433_v24, 0.0  ;;  %v467_v30 = vpack.c.bf16 %v459_v25, %v458_v28 }
  0xf5   : > { %v466_v29 = vpack.c.bf16 %v457_v27, %v456_v26  ;;  %v1382_v27 = vld [vmem:[%s1448_s6] ss:$0 sm:$0xff] }
  0xf7   : > { %1107 = vmatprep.mubr.bf16.mxu1 %v466_v29 }
  0xf8   : > { %1108 = vmatmul.mubr.bf16.gmra.mxu1 %v467_v30 }
 0x1a0   : > { %v1097_v34 = vpop.f32.mrf.mxu1 }
 0x1a1   : > { %v582_v40 = vadd.f32 %v1097_v34, %v1000_v36 }
 0x1a2   : > { %v573_v35 = vpop.f32.mrf.mxu1 }
 0x1a3   : > { %v574_v38 = vadd.f32 %v1000_v36, %v573_v35  ;;  %v638_v47 = vmax.f32 %v582_v40, 0.0 }
 0x1a4   : > { %v1098_v37 = vpop.f32.mrf.mxu1 }
 0x1a5   : > { %v585_v39 = vadd.f32 %v1098_v37, %v1000_v36  ;;  %v636_v45 = vmax.f32 %v574_v38, 0.0 }
 0x1a6   : > { %v576_v41 = vpop.f32.mrf.mxu1 }
 0x1a7   : > { %v577_v42 = vadd.f32 %v1000_v36, %v576_v41  ;;  %v639_v43 = vmax.f32 %v585_v39, 0.0 }
 0x1a8   : > { %v1101_v44 = vpop.f32.mrf.mxu1 }
 0x1a9   : > { %v637_v46 = vmax.f32 %v577_v42, 0.0  ;;  %v653_v50 = vpack.c.bf16 %v639_v43, %v638_v47  ;;  %v598_v54 = vadd.f32 %v1101_v44, %v1000_v36 }
 0x1aa   : > { %v589_v48 = vpop.f32.mrf.mxu1 }
 0x1ab   : > { %v652_v49 = vpack.c.bf16 %v637_v46, %v636_v45  ;;  %v590_v52 = vadd.f32 %v1000_v36, %v589_v48  ;;  %v642_v61 = vmax.f32 %v598_v54, 0.0 }
 0x1ac   : > { %v1102_v51 = vpop.f32.mrf.mxu1 }
 0x1ad   : > { %v601_v53 = vadd.f32 %v1102_v51, %v1000_v36  ;;  %1127 = vmatprep.mubr.bf16.mxu0 %v652_v49  ;;  %v640_v59 = vmax.f32 %v590_v52, 0.0 }
 0x1ae   : > { %v592_v55 = vpop.f32.mrf.mxu1  ;;  %1128 = vmatmul.mubr.bf16.vlgmr.msra.gmra.mxu0 %v653_v50 }
 0x1af   : > { %v593_v56 = vadd.f32 %v1000_v36, %v592_v55  ;;  %v643_v57 = vmax.f32 %v601_v53, 0.0 }
 0x1b0   : > { %v1105_v58 = vpop.f32.mrf.mxu1 }
 0x1b1   : > { %v641_v60 = vmax.f32 %v593_v56, 0.0  ;;  %v655_v0 = vpack.c.bf16 %v643_v57, %v642_v61  ;;  %v614_v4 = vadd.f32 %v1105_v58, %v1000_v36 }
 0x1b2   : > { %v605_v62 = vpop.f32.mrf.mxu1 }
 0x1b3   : > { %v654_v63 = vpack.c.bf16 %v641_v60, %v640_v59  ;;  %v606_v2 = vadd.f32 %v1000_v36, %v605_v62  ;;  %v646_v11 = vmax.f32 %v614_v4, 0.0 }
 0x1b4   : > { %v1106_v1 = vpop.f32.mrf.mxu1 }
 0x1b5   : > { %v617_v3 = vadd.f32 %v1106_v1, %v1000_v36  ;;  %1131 = vmatprep.mubr.bf16.mxu0 %v654_v63  ;;  %v644_v9 = vmax.f32 %v606_v2, 0.0 }
 0x1b6   : > { %v608_v5 = vpop.f32.mrf.mxu1  ;;  %1132 = vmatmul.mubr.bf16.gmra.mxu0 %v655_v0 }
 0x1b7   : > { %v609_v6 = vadd.f32 %v1000_v36, %v608_v5  ;;  %v647_v7 = vmax.f32 %v617_v3, 0.0 }
 0x1b8   : > { %v1109_v8 = vpop.f32.mrf.mxu1 }
 0x1b9   : > { %v645_v10 = vmax.f32 %v609_v6, 0.0  ;;  %v657_v14 = vpack.c.bf16 %v647_v7, %v646_v11  ;;  %v630_v18 = vadd.f32 %v1109_v8, %v1000_v36 }
 0x1ba   : > { %v621_v12 = vpop.f32.mrf.mxu1 }
 0x1bb   : > { %v656_v13 = vpack.c.bf16 %v645_v10, %v644_v9  ;;  %v622_v16 = vadd.f32 %v1000_v36, %v621_v12  ;;  %v650_v24 = vmax.f32 %v630_v18, 0.0 }
 0x1bc   : > { %v1110_v15 = vpop.f32.mrf.mxu1 }
 0x1bd   : > { %v633_v17 = vadd.f32 %v1110_v15, %v1000_v36  ;;  %1135 = vmatprep.mubr.bf16.mxu0 %v656_v13  ;;  %v648_v22 = vmax.f32 %v622_v16, 0.0 }
 0x1be   : > { %v624_v19 = vpop.f32.mrf.mxu1  ;;  %1136 = vmatmul.mubr.bf16.gmra.mxu0 %v657_v14 }
 0x1bf   : > { %v625_v20 = vadd.f32 %v1000_v36, %v624_v19  ;;  %v651_v21 = vmax.f32 %v633_v17, 0.0 }
 0x1c1   : > { %v649_v23 = vmax.f32 %v625_v20, 0.0  ;;  %v659_v26 = vpack.c.bf16 %v651_v21, %v650_v24 }
 0x1c3   : > { %v658_v25 = vpack.c.bf16 %v649_v23, %v648_v22 }
 0x1c5   : > { %1139 = vmatprep.mubr.bf16.mxu0 %v658_v25 }
 0x1c6   : > { %1140 = vmatmul.mubr.bf16.gmra.mxu0 %v659_v26 }
 0x26e   : > { %v1129_v28 = vpop.f32.mrf.mxu0 }
 0x26f   : > { %v774_v29 = vadd.f32 %v1129_v28, %v1382_v27 }
 0x270   : > { %v765_v30 = vpop.f32.mrf.mxu0 }
 0x271   : > { %v830_v31 = vsub.f32 0.0, %v774_v29  ;;  %v766_v32 = vadd.f32 %v1382_v27, %v765_v30 }
 0x272   : > { %v1130_v33 = vpop.f32.mrf.mxu0 }
 0x273   : > { %v848_v34 = vmul.f32 1.442695, %v830_v31  ;;  %v828_v35 = vsub.f32 0.0, %v766_v32  ;;  %v777_v36 = vadd.f32 %v1130_v33, %v1382_v27 }
 0x274   : > { %v768_v37 = vpop.f32.mrf.mxu0 }
 0x275   : > { %1168 = vpow2.f32 %v848_v34  ;;  %v844_v38 = vmul.f32 1.442695, %v828_v35  ;;  %v831_v39 = vsub.f32 0.0, %v777_v36  ;;  %v769_v40 = vadd.f32 %v1382_v27, %v768_v37 }
 0x276   : > { %v1133_v41 = vpop.f32.mrf.mxu0 }
 0x277   : > { %1170 = vpow2.f32 %v844_v38  ;;  %v850_v42 = vmul.f32 1.442695, %v831_v39  ;;  %v829_v43 = vsub.f32 0.0, %v769_v40  ;;  %v790_v44 = vadd.f32 %v1133_v41, %v1382_v27 }
 0x278   : > { %v781_v45 = vpop.f32.mrf.mxu0 }
 0x279   : > { %1172 = vpow2.f32 %v850_v42  ;;  %v846_v46 = vmul.f32 1.442695, %v829_v43  ;;  %v834_v47 = vsub.f32 0.0, %v790_v44  ;;  %v782_v48 = vadd.f32 %v1382_v27, %v781_v45 }
 0x27a   : > { %v1134_v49 = vpop.f32.mrf.mxu0 }
 0x27b   : > { %1174 = vpow2.f32 %v846_v46  ;;  %v856_v50 = vmul.f32 1.442695, %v834_v47  ;;  %v832_v51 = vsub.f32 0.0, %v782_v48  ;;  %v793_v52 = vadd.f32 %v1134_v49, %v1382_v27 }
 0x27c   : > { %v784_v53 = vpop.f32.mrf.mxu0 }
 0x27d   : > { %1176 = vpow2.f32 %v856_v50  ;;  %v852_v54 = vmul.f32 1.442695, %v832_v51  ;;  %v835_v55 = vsub.f32 0.0, %v793_v52  ;;  %v785_v56 = vadd.f32 %v1382_v27, %v784_v53 }
 0x27e   : > { %v1137_v57 = vpop.f32.mrf.mxu0 }
 0x27f   : > { %1178 = vpow2.f32 %v852_v54  ;;  %v858_v58 = vmul.f32 1.442695, %v835_v55  ;;  %v833_v59 = vsub.f32 0.0, %v785_v56  ;;  %v806_v60 = vadd.f32 %v1137_v57, %v1382_v27 }
 0x280   : > { %v797_v61 = vpop.f32.mrf.mxu0 }
 0x281   : > { %1180 = vpow2.f32 %v858_v58  ;;  %v854_v62 = vmul.f32 1.442695, %v833_v59  ;;  %v838_v63 = vsub.f32 0.0, %v806_v60  ;;  %v798_v0 = vadd.f32 %v1382_v27, %v797_v61 }
 0x282   : > { %v1169_v1 = vpop.eup %1168  ;;  %v1138_v2 = vpop.f32.mrf.mxu0 }
 0x283   : > { %v878_v3 = vadd.f32 1.0, %v1169_v1  ;;  %1182 = vpow2.f32 %v854_v62  ;;  %v864_v4 = vmul.f32 1.442695, %v838_v63  ;;  %v836_v5 = vsub.f32 0.0, %v798_v0 }
 0x284   : > { %v1171_v6 = vpop.eup %1170  ;;  %v809_v7 = vadd.f32 %v1138_v2, %v1382_v27  ;;  %v800_v8 = vpop.f32.mrf.mxu0 }
 0x285   : > { %1184 = vrcp.f32 %v878_v3  ;;  %v876_v9 = vadd.f32 1.0, %v1171_v6  ;;  %v860_v10 = vmul.f32 1.442695, %v836_v5  ;;  %v801_v11 = vadd.f32 %v1382_v27, %v800_v8 }
 0x286   : > { %v1173_v12 = vpop.eup %1172  ;;  %1186 = vpow2.f32 %v864_v4  ;;  %v839_v13 = vsub.f32 0.0, %v809_v7  ;;  %v1141_v14 = vpop.f32.mrf.mxu0 }
 0x287   : > { %1188 = vrcp.f32 %v876_v9  ;;  %v879_v15 = vadd.f32 1.0, %v1173_v12  ;;  %v837_v16 = vsub.f32 0.0, %v801_v11  ;;  %v822_v17 = vadd.f32 %v1141_v14, %v1382_v27 }
 0x288   : > { %v1175_v18 = vpop.eup %1174  ;;  %1190 = vpow2.f32 %v860_v10  ;;  %v866_v19 = vmul.f32 1.442695, %v839_v13  ;;  %v813_v20 = vpop.f32.mrf.mxu0 }
 0x289   : > { %1192 = vrcp.f32 %v879_v15  ;;  %v877_v21 = vadd.f32 1.0, %v1175_v18  ;;  %v862_v22 = vmul.f32 1.442695, %v837_v16  ;;  %v842_v23 = vsub.f32 0.0, %v822_v17 }
 0x28a   : > { %v1177_v24 = vpop.eup %1176  ;;  %1194 = vpow2.f32 %v866_v19  ;;  %v814_v25 = vadd.f32 %v1382_v27, %v813_v20  ;;  %v1142_v26 = vpop.f32.mrf.mxu0 }
 0x28b   : > { %1196 = vrcp.f32 %v877_v21  ;;  %v882_v28 = vadd.f32 1.0, %v1177_v24  ;;  %v872_v29 = vmul.f32 1.442695, %v842_v23  ;;  %v825_v30 = vadd.f32 %v1142_v26, %v1382_v27 }
 0x28c   : > { %v1179_v31 = vpop.eup %1178  ;;  %1198 = vpow2.f32 %v862_v22  ;;  %v840_v32 = vsub.f32 0.0, %v814_v25  ;;  %v816_v33 = vpop.f32.mrf.mxu0 }
 0x28d   : > { %1200 = vrcp.f32 %v882_v28  ;;  %v880_v34 = vadd.f32 1.0, %v1179_v31  ;;  %v843_v35 = vsub.f32 0.0, %v825_v30  ;;  %v817_v36 = vadd.f32 %v1382_v27, %v816_v33 }
 0x28e   : > { %v1181_v37 = vpop.eup %1180  ;;  %1202 = vpow2.f32 %v872_v29  ;;  %v868_v38 = vmul.f32 1.442695, %v840_v32 }
 0x28f   : > { %1204 = vrcp.f32 %v880_v34  ;;  %v883_v39 = vadd.f32 1.0, %v1181_v37  ;;  %v874_v40 = vmul.f32 1.442695, %v843_v35  ;;  %v841_v41 = vsub.f32 0.0, %v817_v36 }
 0x290   : > { %v1183_v42 = vpop.eup %1182  ;;  %1206 = vpow2.f32 %v868_v38 }
 0x291   : > { %1208 = vrcp.f32 %v883_v39  ;;  %v881_v27 = vadd.f32 1.0, %v1183_v42  ;;  %v870_v43 = vmul.f32 1.442695, %v841_v41 }
 0x292   : > { %v1185_v44 = vpop.eup %1184  ;;  %1210 = vpow2.f32 %v874_v40 }
 0x293   : > { %v1187_v45 = vpop.eup %1186  ;;  %911 = vst.msk [vmem:[%s1405_s9 + $0x10] sm:$0xff] %vm908_vm1, %v1185_v44  ;;  %1212 = vrcp.f32 %v881_v27 }
 0x294   : > { %v1189_v46 = vpop.eup %1188  ;;  %v886_v47 = vadd.f32 1.0, %v1187_v45  ;;  %1214 = vpow2.f32 %v870_v43 }
 0x295   : > { %v1191_v48 = vpop.eup %1190  ;;  %909 = vst.msk [vmem:[%s1405_s9] sm:$0xff] %vm908_vm1, %v1189_v46 }
 0x296   : > { %v1193_v49 = vpop.eup %1192  ;;  %1216 = vrcp.f32 %v886_v47  ;;  %v884_v50 = vadd.f32 1.0, %v1191_v48 }
 0x297   : > { %v1195_v51 = vpop.eup %1194  ;;  %912 = vst.msk [vmem:[%s1405_s9 + $0x18] sm:$0xff] %vm908_vm1, %v1193_v49 }
 0x298   : > { %v1197_v52 = vpop.eup %1196  ;;  %1218 = vrcp.f32 %v884_v50  ;;  %v887_v53 = vadd.f32 1.0, %v1195_v51 }
 0x299   : > { %v1199_v54 = vpop.eup %1198  ;;  %910 = vst.msk [vmem:[%s1405_s9 + $0x8] sm:$0xff] %vm908_vm1, %v1197_v52 }
 0x29a   : > { %v1201_v55 = vpop.eup %1200  ;;  %1220 = vrcp.f32 %v887_v53  ;;  %v885_v56 = vadd.f32 1.0, %v1199_v54 }
 0x29b   : > { %v1203_v57 = vpop.eup %1202  ;;  %915 = vst.msk [vmem:[%s1405_s9 + $0x30] sm:$0xff] %vm908_vm1, %v1201_v55 }
 0x29c   : > { %v1205_v58 = vpop.eup %1204  ;;  %1222 = vrcp.f32 %v885_v56  ;;  %v890_v59 = vadd.f32 1.0, %v1203_v57 }
 0x29d   : > { %v1207_v60 = vpop.eup %1206  ;;  %913 = vst.msk [vmem:[%s1405_s9 + $0x20] sm:$0xff] %vm908_vm1, %v1205_v58 }
 0x29e   : > { %v1209_v61 = vpop.eup %1208  ;;  %1224 = vrcp.f32 %v890_v59  ;;  %v888_v62 = vadd.f32 1.0, %v1207_v60 }
 0x29f   : > { %v1211_v63 = vpop.eup %1210  ;;  %916 = vst.msk [vmem:[%s1405_s9 + $0x38] sm:$0xff] %vm908_vm1, %v1209_v61 }
 0x2a0   : > { %v1213_v0 = vpop.eup %1212  ;;  %1226 = vrcp.f32 %v888_v62  ;;  %v891_v1 = vadd.f32 1.0, %v1211_v63 }
 0x2a1   : > { %v1215_v2 = vpop.eup %1214  ;;  %914 = vst.msk [vmem:[%s1405_s9 + $0x28] sm:$0xff] %vm908_vm1, %v1213_v0 }
 0x2a2   : > { %1228 = vrcp.f32 %v891_v1  ;;  %v889_v3 = vadd.f32 1.0, %v1215_v2 }
 0x2a3   : > { %v1217_v4 = vpop.eup %1216 }
 0x2a4   : > { %919 = vst.msk [vmem:[%s1405_s9 + $0x50] sm:$0xff] %vm908_vm1, %v1217_v4  ;;  %1230 = vrcp.f32 %v889_v3 }
 0x2a5   : > { %v1219_v5 = vpop.eup %1218 }
 0x2a6   : > { %917 = vst.msk [vmem:[%s1405_s9 + $0x40] sm:$0xff] %vm908_vm1, %v1219_v5 }
 0x2a7   : > { %v1221_v6 = vpop.eup %1220 }
 0x2a8   : > { %920 = vst.msk [vmem:[%s1405_s9 + $0x58] sm:$0xff] %vm908_vm1, %v1221_v6 }
 0x2a9   : > { %v1223_v7 = vpop.eup %1222 }
 0x2aa   : > { %918 = vst.msk [vmem:[%s1405_s9 + $0x48] sm:$0xff] %vm908_vm1, %v1223_v7 }
 0x2ab   : > { %v1225_v8 = vpop.eup %1224 }
 0x2ac   : > { %923 = vst.msk [vmem:[%s1405_s9 + $0x70] sm:$0xff] %vm908_vm1, %v1225_v8 }
 0x2ad   : > { %v1227_v9 = vpop.eup %1226 }
 0x2ae   : > { %921 = vst.msk [vmem:[%s1405_s9 + $0x60] sm:$0xff] %vm908_vm1, %v1227_v9 }
 0x2af   : > { %v1229_v10 = vpop.eup %1228 }
 0x2b0   : > { %924 = vst.msk [vmem:[%s1405_s9 + $0x78] sm:$0xff] %vm908_vm1, %v1229_v10 }
 0x2b1   : > { %v1231_v11 = vpop.eup %1230 }
 0x2b2   : > { %922 = vst.msk [vmem:[%s1405_s9 + $0x68] sm:$0xff] %vm908_vm1, %v1231_v11 }
 0x2b3 PF: > { %s17_s24 = sadd.s32 1, %s1238_s24  }
 0x2b4   : > { %p14_p4 = scmp.ge.s32.totalorder %s17_s24, 4  }
 0x2b6   :  { %16 = sbr.rel (!%p14_p4) target bundleno = 1 (0x1), region = 78 }

</bundles_post_ra>
